<compile_context>
chip_gen: v6e
topology: v6e:2x2x1
jax: 0.10.0
libtpu: 0.0.40
codegen_flags: <defaults>
</compile_context>

<pallas_src>
import jax
import jax.numpy as jnp
from jax.experimental import pallas as pl
from jax.experimental.pallas import tpu as pltpu  # noqa: F401  (TPU backend)


def _take_real_pair_kernel(x_ref, z_ref, x_out_ref, z_out_ref):
    # torch.real(torch.complex(re, im)) == re exactly; the imaginary parts
    # never influence the result and are never staged into VMEM.
    x_out_ref[...] = x_ref[...]
    z_out_ref[...] = z_ref[...]


def model_forward(x, y, z, w):
    """Mirrors Model.forward: (real(complex(x, y)), real(complex(z, w))).

    Single fused pallas_call; imaginary tensors are dropped before the kernel
    boundary since real() discards them bit-exactly.
    """
    del y, w  # imaginary parts do not affect real(); skip their DMA entirely

    def full_spec(a):
        # Whole array as one VMEM block (block_shape == array shape).
        return pl.BlockSpec(a.shape, lambda: tuple(0 for _ in a.shape))

    x_out, z_out = pl.pallas_call(
        _take_real_pair_kernel,
        out_shape=(
            jax.ShapeDtypeStruct(x.shape, x.dtype),
            jax.ShapeDtypeStruct(z.shape, z.dtype),
        ),
        grid=(),
        in_specs=[full_spec(x), full_spec(z)],
        out_specs=(full_spec(x), full_spec(z)),
    )(x, z)
    return x_out, z_out


if __name__ == "__main__":
    key = jax.random.PRNGKey(0)
    k0, k1, k2, k3 = jax.random.split(key, 4)

    # Small shapes consistent with the pnnx test harness for torch.real
    # (two independent real/imag tensor pairs of different ranks).
    x = jax.random.uniform(k0, (1, 3, 16), dtype=jnp.float32)
    y = jax.random.uniform(k1, (1, 3, 16), dtype=jnp.float32)
    z = jax.random.uniform(k2, (1, 5, 9, 11), dtype=jnp.float32)
    w = jax.random.uniform(k3, (1, 5, 9, 11), dtype=jnp.float32)

    x_out, z_out = model_forward(x, y, z, w)
    jax.block_until_ready((x_out, z_out))

    # Reference check: real(complex(a, b)) == a (bit-exact)
    assert x_out.shape == x.shape and x_out.dtype == x.dtype
    assert z_out.shape == z.shape and z_out.dtype == z.dtype
    assert bool(jnp.all(x_out == x))
    assert bool(jnp.all(z_out == z))

    print("KERNEL_OK")
</pallas_src>

<mosaic_0001>
module attributes {stable_mosaic.version = 11 : i64} {
  func.func @_take_real_pair_kernel(%arg0: memref<1x3x16xf32, #tpu.memory_space<vmem>>, %arg1: memref<1x5x9x11xf32, #tpu.memory_space<vmem>>, %arg2: memref<1x3x16xf32, #tpu.memory_space<vmem>>, %arg3: memref<1x5x9x11xf32, #tpu.memory_space<vmem>>) attributes {dimension_semantics = [], scalar_prefetch = 0 : i64, scratch_operands = 0 : i64, tpu.core_type = #tpu.core_type<tc>} {
    %c0 = arith.constant 0 : index
    %c0_0 = arith.constant 0 : index
    %c0_1 = arith.constant 0 : index
    %0 = vector.load %arg0[%c0, %c0_0, %c0_1] : memref<1x3x16xf32, #tpu.memory_space<vmem>>, vector<1x3x16xf32>
    %c0_2 = arith.constant 0 : index
    %c0_3 = arith.constant 0 : index
    %c0_4 = arith.constant 0 : index
    %1 = vector.load %arg2[%c0_2, %c0_3, %c0_4] : memref<1x3x16xf32, #tpu.memory_space<vmem>>, vector<1x3x16xf32>
    tpu.vector_store %arg2[%c0_2, %c0_3, %c0_4], %0 {strides = array<i32>} : memref<1x3x16xf32, #tpu.memory_space<vmem>>, vector<1x3x16xf32>,
    %c0_5 = arith.constant 0 : index
    %c0_6 = arith.constant 0 : index
    %c0_7 = arith.constant 0 : index
    %c0_8 = arith.constant 0 : index
    %2 = vector.load %arg1[%c0_5, %c0_6, %c0_7, %c0_8] : memref<1x5x9x11xf32, #tpu.memory_space<vmem>>, vector<1x5x9x11xf32>
    %c0_9 = arith.constant 0 : index
    %c0_10 = arith.constant 0 : index
    %c0_11 = arith.constant 0 : index
    %c0_12 = arith.constant 0 : index
    %3 = vector.load %arg3[%c0_9, %c0_10, %c0_11, %c0_12] : memref<1x5x9x11xf32, #tpu.memory_space<vmem>>, vector<1x5x9x11xf32>
    tpu.vector_store %arg3[%c0_9, %c0_10, %c0_11, %c0_12], %2 {strides = array<i32>} : memref<1x5x9x11xf32, #tpu.memory_space<vmem>>, vector<1x5x9x11xf32>,
    return
  }
}

</mosaic_0001>

<bundles_post_ra>
// kernel: tpu_custom_call.1
= control target key start
LH: loop header
LB: loop body
LE: loop exit
PB: predicated region body
PF: predicated region fallthrough
CT: control target
= control target key end

     0   :  { %vm14_vm0 = vcmask 124928   ;;  %vm26_vm1 = vcmask 89088   ;;  %vm28_vm2 = vcmask 81920   ;;  %s142_s0 = inlined_call_operand.vmem [shape: f32[1,3,16], index: 0, kind: input, shape index: {}]   ;;  %s143_s2 = inlined_call_operand.vmem [shape: f32[1,3,16], index: 2, kind: output, shape index: {0}]   ;;  %s144_s1 = inlined_call_operand.vmem [shape: f32[1,5,9,11], index: 1, kind: input, shape index: {}]   ;;  %s145_s3 = inlined_call_operand.vmem [shape: f32[1,5,9,11], index: 3, kind: output, shape index: {1}]  }
   0x1   :  { %v13_v0 = vld [vmem:[%s142_s0] sm:$0x7]  ;;  %v17_v2 = vld [vmem:[%s144_s1 + $0x8] sm:$0x1]  ;;  %v18_v3 = vld [vmem:[%s144_s1 + $0x10] sm:$0xff] }
   0x2   :  { %v16_v1 = vld [vmem:[%s144_s1] sm:$0xff]  ;;  %15 = vst.msk [vmem:[%s143_s2] sm:$0x7] %vm14_vm0, %v13_v0  ;;  %v19_v4 = vld [vmem:[%s144_s1 + $0x18] sm:$0x1]  ;;  %v22_v7 = vld [vmem:[%s144_s1 + $0x30] sm:$0xff] }
   0x3   :  { %27 = vst.msk [vmem:[%s145_s3] sm:$0xff] %vm26_vm1, %v16_v1  ;;  %v20_v5 = vld [vmem:[%s144_s1 + $0x20] sm:$0xff]  ;;  %30 = vst.msk [vmem:[%s145_s3 + $0x10] sm:$0xff] %vm26_vm1, %v18_v3  ;;  %v21_v6 = vld [vmem:[%s144_s1 + $0x28] sm:$0x1] }
   0x4   :  { %29 = vst.msk [vmem:[%s145_s3 + $0x8] sm:$0x1] %vm28_vm2, %v17_v2  ;;  %31 = vst.msk [vmem:[%s145_s3 + $0x18] sm:$0x1] %vm28_vm2, %v19_v4  ;;  %v23_v8 = vld [vmem:[%s144_s1 + $0x38] sm:$0x1] }
   0x5   :  { %32 = vst.msk [vmem:[%s145_s3 + $0x20] sm:$0xff] %vm26_vm1, %v20_v5  ;;  %34 = vst.msk [vmem:[%s145_s3 + $0x30] sm:$0xff] %vm26_vm1, %v22_v7  ;;  %v24_v9 = vld [vmem:[%s144_s1 + $0x40] sm:$0xff]  ;;  %v25_v10 = vld [vmem:[%s144_s1 + $0x48] sm:$0x1] }
   0x6   :  { %33 = vst.msk [vmem:[%s145_s3 + $0x28] sm:$0x1] %vm28_vm2, %v21_v6  ;;  %35 = vst.msk [vmem:[%s145_s3 + $0x38] sm:$0x1] %vm28_vm2, %v23_v8 }
   0x7   :  { %36 = vst.msk [vmem:[%s145_s3 + $0x40] sm:$0xff] %vm26_vm1, %v24_v9 }
   0x8   :  { %37 = vst.msk [vmem:[%s145_s3 + $0x48] sm:$0x1] %vm28_vm2, %v25_v10 }

</bundles_post_ra>
